<compile_context>
chip_gen: v7x
topology: tpu7x:2x2x1
jax: 0.10.0
libtpu: 0.0.40
codegen_flags: <defaults>
</compile_context>

<pallas_src>
import math

import jax
import jax.numpy as jnp
from jax.experimental import pallas as pl
from jax.experimental.pallas import tpu as pltpu

IN_DIM = 28 * 28     # 784
HID_DIM = 64
OUT_DIM = 3

HID_PAD = 128        # lane-dense hidden width (zero-padded 64 -> 128)
OUT_PAD = 128        # lane-dense internal width for the second matmul
MAX_TILE_B = 4096    # keeps double-buffered x tiles well inside v7x's 64 MiB VMEM


def _round_up(n, m):
    return ((n + m - 1) // m) * m


def encoder_kernel(x_ref, w1_ref, b1_ref, w2_ref, b2_ref, o_ref):
    # Layer 1: Linear(784 -> 128 padded) + ReLU. Operands cast to the (bf16)
    # weight dtype -> single MXU pass on v5e/v7x; f32 accumulation over K=784.
    x = x_ref[...].astype(w1_ref.dtype)
    h = jnp.dot(x, w1_ref[...], preferred_element_type=jnp.float32)
    h = jnp.maximum(h + b1_ref[...], 0.0)          # bias (1,128) broadcasts; VPU ReLU

    # Layer 2: Linear(128 padded -> 128 padded). Padded rows/cols of w2 are
    # zero, so only the first OUT_DIM columns carry signal.
    y = jnp.dot(h.astype(w2_ref.dtype), w2_ref[...],
                preferred_element_type=jnp.float32)

    # Narrow only at the store: write the true 3 output columns (masked vst),
    # avoiding a 128-wide padded output + post-kernel HBM slice.
    o_ref[...] = (y[:, :OUT_DIM] + b2_ref[...]).astype(o_ref.dtype)


def prepare_encoder_params(w1, b1, w2, b2, *, matmul_dtype=jnp.bfloat16):
    """Pad/cast parameters once, outside the per-call path.

    w1: (784, 64), b1: (64,)|(1,64), w2: (64, 3), b2: (3,)|(1,3).
    """
    w1p = jnp.zeros((IN_DIM, HID_PAD), matmul_dtype).at[:, :HID_DIM].set(
        w1.astype(matmul_dtype))
    b1p = jnp.zeros((1, HID_PAD), jnp.float32).at[:, :HID_DIM].set(
        jnp.reshape(b1, (1, HID_DIM)).astype(jnp.float32))
    w2p = jnp.zeros((HID_PAD, OUT_PAD), matmul_dtype).at[:HID_DIM, :OUT_DIM].set(
        w2.astype(matmul_dtype))
    b2p = jnp.reshape(b2, (1, OUT_DIM)).astype(jnp.float32)
    return w1p, b1p, w2p, b2p


def encoder_forward(x, params, *, tile_b=2048):
    """x: (B, 784) float32 or bfloat16; params from prepare_encoder_params."""
    w1p, b1p, w2p, b2p = params
    B = x.shape[0]

    # Batch tile: large (amortize per-step overhead), capped for v7x VMEM,
    # split >= 2 ways so both v7x TensorCores get work, multiple of 8 sublanes.
    # No padding of x: grid = cdiv(B, tile); Pallas masks the partial final
    # block, and its garbage rows only produce rows >= B that are never stored.
    tile = min(min(tile_b, MAX_TILE_B), _round_up(pl.cdiv(B, 2), 8))
    tile = max(8, tile)
    grid = (pl.cdiv(B, tile),)

    return pl.pallas_call(
        encoder_kernel,
        out_shape=jax.ShapeDtypeStruct((B, OUT_DIM), x.dtype),
        grid_spec=pltpu.PrefetchScalarGridSpec(
            num_scalar_prefetch=0,
            grid=grid,
            in_specs=[
                # x: tile over batch only; feature dim (784) whole.
                pl.BlockSpec((tile, IN_DIM), lambda i: (i, 0)),
                # Weights / biases: constant block index -> stay resident
                # across grid steps (no per-step re-DMA).
                pl.BlockSpec((IN_DIM, HID_PAD), lambda i: (0, 0)),
                pl.BlockSpec((1, HID_PAD), lambda i: (0, 0)),
                pl.BlockSpec((HID_PAD, OUT_PAD), lambda i: (0, 0)),
                pl.BlockSpec((1, OUT_DIM), lambda i: (0, 0)),
            ],
            # Narrow output block: last dim equals the full array dim (3),
            # satisfying the (8,128) rule; no wrapper-side slice needed.
            out_specs=pl.BlockSpec((tile, OUT_DIM), lambda i: (i, 0)),
        ),
        compiler_params=pltpu.CompilerParams(
            dimension_semantics=("parallel",),
            # ~13 MB of double-buffered x at tile=2048 (+<1 MB resident
            # weights); generous headroom below v7x's 64 MiB physical VMEM.
            vmem_limit_bytes=40 * 1024 * 1024,
        ),
    )(x, w1p, b1p, w2p, b2p)


def init_params(key):
    """Deterministic init mirroring nn.Linear's default U(-1/sqrt(fan_in), +)."""
    k1, k2, k3, k4 = jax.random.split(key, 4)
    bound1 = 1.0 / math.sqrt(IN_DIM)
    bound2 = 1.0 / math.sqrt(HID_DIM)
    w1 = jax.random.uniform(k1, (IN_DIM, HID_DIM), jnp.float32, -bound1, bound1)
    b1 = jax.random.uniform(k2, (1, HID_DIM), jnp.float32, -bound1, bound1)
    w2 = jax.random.uniform(k3, (HID_DIM, OUT_DIM), jnp.float32, -bound2, bound2)
    b2 = jax.random.uniform(k4, (1, OUT_DIM), jnp.float32, -bound2, bound2)
    return w1, b1, w2, b2


if __name__ == "__main__":
    key = jax.random.PRNGKey(0)
    kx, kp = jax.random.split(key)

    # Small, non-tile-aligned batch: exercises the masked partial final block
    # and a 2-step grid (both v7x TensorCores active).
    B = 13
    x = jax.random.normal(kx, (B, IN_DIM), jnp.float32)
    w1, b1, w2, b2 = init_params(kp)

    params = prepare_encoder_params(w1, b1, w2, b2)   # pad / cast once
    out = encoder_forward(x, params)
    out = jax.block_until_ready(out)

    # Reference in plain f32 JAX (same math as the PyTorch forward).
    # bf16 matmul operands (f32 accumulation) => loosened tolerance.
    ref = jnp.maximum(x @ w1 + b1, 0.0) @ w2 + b2
    assert out.shape == (B, OUT_DIM), out.shape
    assert jnp.allclose(out, ref, atol=3e-2, rtol=3e-2), (
        float(jnp.max(jnp.abs(out - ref))))

    print("KERNEL_OK")
</pallas_src>

<mosaic_0001>
module attributes {stable_mosaic.version = 11 : i64} {
  func.func @encoder_kernel(%arg0: i32, %arg1: memref<8x784xf32, #tpu.memory_space<vmem>>, %arg2: memref<784x128xbf16, #tpu.memory_space<vmem>>, %arg3: memref<1x128xf32, #tpu.memory_space<vmem>>, %arg4: memref<128x128xbf16, #tpu.memory_space<vmem>>, %arg5: memref<1x3xf32, #tpu.memory_space<vmem>>, %arg6: memref<8x3xf32, #tpu.memory_space<vmem>>) attributes {dimension_semantics = [#tpu.dimension_semantics<parallel>], iteration_bounds = array<i64: 2>, scalar_prefetch = 0 : i64, scratch_operands = 0 : i64, tpu.core_type = #tpu.core_type<tc>, window_params = [{transform_indices = @transform_0, window_bounds = array<i64: 8, 784>}, {pipeline_mode = #tpu.pipeline_mode<synchronous>, transform_indices = @transform_1, window_bounds = array<i64: 784, 128>}, {pipeline_mode = #tpu.pipeline_mode<synchronous>, transform_indices = @transform_2, window_bounds = array<i64: 1, 128>}, {pipeline_mode = #tpu.pipeline_mode<synchronous>, transform_indices = @transform_3, window_bounds = array<i64: 128, 128>}, {pipeline_mode = #tpu.pipeline_mode<synchronous>, transform_indices = @transform_4, window_bounds = array<i64: 1, 3>}, {transform_indices = @transform_5, window_bounds = array<i64: 8, 3>}]} {
    %c0 = arith.constant 0 : index
    %c0_0 = arith.constant 0 : index
    %0 = vector.load %arg1[%c0, %c0_0] : memref<8x784xf32, #tpu.memory_space<vmem>>, vector<8x784xf32>
    %1 = arith.truncf %0 : vector<8x784xf32> to vector<8x784xbf16>
    %c0_1 = arith.constant 0 : index
    %c0_2 = arith.constant 0 : index
    %2 = vector.load %arg2[%c0_1, %c0_2] : memref<784x128xbf16, #tpu.memory_space<vmem>>, vector<784x128xbf16>
    %cst = arith.constant dense<0.000000e+00> : vector<8x128xf32>
    %3 = tpu.matmul %1, %2, %cst {dimension_numbers = #tpu.dot_dimension_numbers<[1], [0], [0], [1], [0, 0, 1, 1], [], []>} : vector<8x784xbf16>, vector<784x128xbf16>, vector<8x128xf32> -> vector<8x128xf32>
    %c0_3 = arith.constant 0 : index
    %c0_4 = arith.constant 0 : index
    %4 = vector.load %arg3[%c0_3, %c0_4] : memref<1x128xf32, #tpu.memory_space<vmem>>, vector<1x128xf32>
    %5 = vector.broadcast %4 : vector<1x128xf32> to vector<8x128xf32>
    %6 = arith.addf %3, %5 : vector<8x128xf32>
    %cst_5 = arith.constant 0.000000e+00 : f32
    %7 = vector.broadcast %cst_5 : f32 to vector<8x128xf32>
    %8 = arith.maximumf %6, %7 : vector<8x128xf32>
    %9 = arith.truncf %8 : vector<8x128xf32> to vector<8x128xbf16>
    %c0_6 = arith.constant 0 : index
    %c0_7 = arith.constant 0 : index
    %10 = vector.load %arg4[%c0_6, %c0_7] : memref<128x128xbf16, #tpu.memory_space<vmem>>, vector<128x128xbf16>
    %cst_8 = arith.constant dense<0.000000e+00> : vector<8x128xf32>
    %11 = tpu.matmul %9, %10, %cst_8 {dimension_numbers = #tpu.dot_dimension_numbers<[1], [0], [0], [1], [0, 0, 1, 1], [], []>} : vector<8x128xbf16>, vector<128x128xbf16>, vector<8x128xf32> -> vector<8x128xf32>
    %12 = vector.extract_strided_slice %11 {offsets = [0, 0], sizes = [8, 3], strides = [1, 1]} : vector<8x128xf32> to vector<8x3xf32>
    %c0_9 = arith.constant 0 : index
    %c0_10 = arith.constant 0 : index
    %13 = vector.load %arg5[%c0_9, %c0_10] : memref<1x3xf32, #tpu.memory_space<vmem>>, vector<1x3xf32>
    %14 = vector.broadcast %13 : vector<1x3xf32> to vector<8x3xf32>
    %15 = arith.addf %12, %14 : vector<8x3xf32>
    %c0_11 = arith.constant 0 : index
    %c0_12 = arith.constant 0 : index
    %16 = vector.load %arg6[%c0_11, %c0_12] : memref<8x3xf32, #tpu.memory_space<vmem>>, vector<8x3xf32>
    tpu.vector_store %arg6[%c0_11, %c0_12], %15 {strides = array<i32>} : memref<8x3xf32, #tpu.memory_space<vmem>>, vector<8x3xf32>,
    return
  }
  func.func @transform_0(%arg0: i32) -> (i32, i32) {
    %c0_i32 = arith.constant 0 : i32
    %c0_i32_0 = arith.constant 0 : i32
    return %arg0, %c0_i32 : i32, i32
  }
  func.func @transform_1(%arg0: i32) -> (i32, i32) {
    %c0_i32 = arith.constant 0 : i32
    %c0_i32_0 = arith.constant 0 : i32
    %c0_i32_1 = arith.constant 0 : i32
    return %c0_i32, %c0_i32_0 : i32, i32
  }
  func.func @transform_2(%arg0: i32) -> (i32, i32) {
    %c0_i32 = arith.constant 0 : i32
    %c0_i32_0 = arith.constant 0 : i32
    %c0_i32_1 = arith.constant 0 : i32
    return %c0_i32, %c0_i32_0 : i32, i32
  }
  func.func @transform_3(%arg0: i32) -> (i32, i32) {
    %c0_i32 = arith.constant 0 : i32
    %c0_i32_0 = arith.constant 0 : i32
    %c0_i32_1 = arith.constant 0 : i32
    return %c0_i32, %c0_i32_0 : i32, i32
  }
  func.func @transform_4(%arg0: i32) -> (i32, i32) {
    %c0_i32 = arith.constant 0 : i32
    %c0_i32_0 = arith.constant 0 : i32
    %c0_i32_1 = arith.constant 0 : i32
    return %c0_i32, %c0_i32_0 : i32, i32
  }
  func.func @transform_5(%arg0: i32) -> (i32, i32) {
    %c0_i32 = arith.constant 0 : i32
    %c0_i32_0 = arith.constant 0 : i32
    return %arg0, %c0_i32 : i32, i32
  }
}

</mosaic_0001>

<bundles_post_ra>
// kernel: tpu_custom_call.1
= control target key start
LH: loop header
LB: loop body
LE: loop exit
PB: predicated region body
PF: predicated region fallthrough
CT: control target
= control target key end

     0   :  { %10 = vsyncpa [#allocation3], 0  ;;  %s1710_s0 = inlined_call_operand.hbm [shape: f32[13,784], index: 0, kind: input, shape index: {}]   ;;  %s1711_s1 = inlined_call_operand.hbm [shape: bf16[784,128], index: 1, kind: input, shape index: {}]   ;;  %s1712_s2 = inlined_call_operand.vmem [shape: f32[1,128], index: 2, kind: input, shape index: {}]   ;;  %s1713_s3 = inlined_call_operand.hbm [shape: bf16[128,128], index: 3, kind: input, shape index: {}]   ;;  %s1714_s4 = inlined_call_operand.vmem [shape: f32[1,3], index: 4, kind: input, shape index: {}]   ;;  %s1715_s5 = inlined_call_operand.vmem [shape: f32[13,3], index: 5, kind: output, shape index: {}]  }
   0x1   :  { %12 = vsyncpa [#allocation3 + $0x1], 0 }
   0x2   :  { %13 = vsyncpa [#allocation5], 0  ;;  %s1510_s18 = smov 0   ;;  %s1512_s19 = smov 0  }
   0x3   :  { %s1514_s20 = smov 0   ;;  %s1516_s21 = smov 0  }
   0x4 LB: > { %s1529_s22 = sadd.s32 4294967295, %s1471_s21   ;;  %p39_p0 = scmp.ne.s32.totalorder %s1463_s19, %s1459_s18  ;;  %s1471_s21 = sphi %s1516_s21, %s1730_s21   ;;  %s1467_s20 = sphi %s1514_s20, %s1729_s20   ;;  %s1463_s19 = sphi %s1512_s19, %s1728_s19   ;;  %s1459_s18 = sphi %s1510_s18, %s1727_s18  }
   0x5   : > { %p1716_p1 = scmp.eq.s32.totalorder %s1529_s22, 0  ;;  %p1049_p2 = scmp.ge.s32.totalorder %s1471_s21, 1 }
   0x6   : > { %p160_p3 = scmp.lt.s32.totalorder %s1471_s21, 3  ;;  %s1473_s25 = smov [#allocation4]  }
   0x7   : > { %p1537_p4 = por %p1716_p1, %p39_p0  ;;  %s172_s26 = sshll.u32 %s1473_s25, 4  ;;  %s173_s26 = int_to_ptr.vmem [resolvable:$true] %s172_s26 }
   0x8   : > { %p1541_p5 = pnand %p1049_p2, %p160_p3  ;;  %s1474_s28 = smov [#allocation6]  }
   0x9   : > { %s1719_s23 = scalar_select %p1537_p4, 1, 0 }
   0xa   : > { %s1720_s24 = scalar_select %p1541_p5, 1, 0 }
   0xb   : > { %p1236_p6 = pneg %p1541_p5  ;;  %s188_s29 = sshll.u32 %s1474_s28, 4  ;;  %s1553_s29 = int_to_ptr.vmem [resolvable:$true] %s188_s29 }
   0xc   : > { %s1347_s7 = scalar_lea.hbm %s1711_s1, 6272 }
   0xd   : > { %p1549_p7 = pnand %p1236_p6, %p1716_p1  ;;  %p1348_p8 = scmp.ne.s32.totalorder %s1711_s1, %s1347_s7 }
   0xe   : > { %p1354_p12 = scmp.lt.u32.totalorder %s1347_s7, %s1711_s1 }
   0xf   : > { %p1349_p9 = pneg %p1549_p7 }
  0x11   : > { %p1350_p10 = pnand %p1349_p9, %p1348_p8 }
  0x13   : > { %p1351_p11 = pneg %p1350_p10 }
  0x15   : > { %p1356_p13 = pnand %p1354_p12, %p1351_p11 }
  0x17   : > { %1359 = shalt.err (!%p1356_p13)
}
  0x18   : > { %s1360_s12 = scalar_lea.vmem %s173_s26, 6272  ;;  %p1368_p6 = scmp.lt.s32.totalorder %s173_s26, %s173_s26 }
  0x19   : > { %p1361_p0 = scmp.ne.s32.totalorder %s173_s26, %s1360_s12  ;;  %p1369_p1 = scmp.lt.s32.totalorder %s1360_s12, %s1360_s12 }
  0x1b   : > { %p1363_p2 = pnand %p1361_p0, %p1349_p9  ;;  %p1370_p4 = por %p1369_p1, %p1368_p6 }
  0x1d   : > { %p1364_p3 = pneg %p1363_p2 }
  0x1f   : > { %p1371_p5 = pnand %p1370_p4, %p1364_p3 }
  0x21   : > { %1374 = shalt.err (!%p1371_p5)
}
  0x22   : > { %s1475_s13 = smov 64   ;;  %s1476_s14 = smov 4  }
  0x23   : > { %1239 = dma.hbm_to_vmem [thread:$0]  (!%p1549_p7), %s1711_s1, 6272, %s173_s26, [#allocation5], %s1475_s13, %s1475_s13, %s1476_s14  }
  0x24   : > { %s1375_s25 = scalar_lea.hbm %s1713_s3, 1024 }
  0x25   : > { %p1376_p8 = scmp.ne.s32.totalorder %s1713_s3, %s1375_s25  ;;  %p1382_p5 = scmp.lt.u32.totalorder %s1375_s25, %s1713_s3 }
  0x27   : > { %p1378_p1 = pnand %p1376_p8, %p1349_p9 }
  0x29   : > { %p1379_p4 = pneg %p1378_p1 }
  0x2b   : > { %p1384_p10 = pnand %p1382_p5, %p1379_p4 }
  0x2d   : > { %1387 = shalt.err (!%p1384_p10)
}
  0x2e   : > { %s1388_s26 = scalar_lea.vmem %s1553_s29, 1024  ;;  %p1396_p0 = scmp.lt.s32.totalorder %s1553_s29, %s1553_s29 }
  0x2f   : > { %p1389_p11 = scmp.ne.s32.totalorder %s1553_s29, %s1388_s26  ;;  %p1397_p2 = scmp.lt.s32.totalorder %s1388_s26, %s1388_s26 }
  0x31   : > { %p1391_p12 = pnand %p1389_p11, %p1349_p9  ;;  %p1398_p3 = por %p1397_p2, %p1396_p0 }
  0x33   : > { %p1392_p13 = pneg %p1391_p12 }
  0x35   : > { %p1399_p6 = pnand %p1398_p3, %p1392_p13 }
  0x37   : > { %1402 = shalt.err (!%p1399_p6)
}
  0x38   : > { %1242 = dma.hbm_to_vmem [thread:$0]  (!%p1549_p7), %s1713_s3, 1024, %s1553_s29, [#allocation5], %s1475_s13, %s1475_s13, %s1476_s14  }
  0x39   : > { %s1603_s10 = sadd.s32 1, %s1471_s21   ;;  %s26_s11 = sadd.s32 1, %s1467_s20 }
  0x3a   : > { %s23_s27 = ssub.s32 %s1471_s21, %s1603_s10  ;;  %p33_p9 = scmp.ne.s32.totalorder %s1467_s20, %s1463_s19 }
  0x3b   : > { %p24_p8 = scmp.eq.s32.totalorder %s23_s27, 0  ;;  %p34_p1 = scmp.eq.s32.totalorder %s1471_s21, 0 }
  0x3c   : > { %p1249_p4 = scmp.lt.s32.totalorder %s1471_s21, 2  ;;  %s205_s12 = sand.u32 1, %s1467_s20  }
  0x3d   : > { %s1614_s15 = scalar_select %p24_p8, %s1467_s20, %s26_s11  }
  0x3e   : > { %p35_p5 = por %p34_p1, %p33_p9  ;;  %s1223_s16 = smul.u32 56, %s205_s12 }
  0x3f   : > { %s1224_s17 = smul.u32 896, %s1471_s21  ;;  %s206_s21 = scalar_lea.sflag [#allocation3], %s205_s12 }
  0x40   : > { %p1617_p10 = pnand %p1249_p4, %p35_p5  ;;  %s209_s25 = scalar_lea.vmem [#allocation2], %s1223_s16 }
  0x41   : > { %s1624_s14 = scalar_lea.hbm %s1710_s0, %s1224_s17  ;;  %s217_s28 = sshll.u32 %s209_s25, 4  ;;  %s1626_s28 = int_to_ptr.vmem [resolvable:$true] %s217_s28 }
  0x42   : > { %s1403_s30 = scalar_lea.hbm %s1624_s14, 896  ;;  %p1405_p11 = pneg %p1617_p10 }
  0x43   : > { %p1404_p7 = scmp.ne.s32.totalorder %s1624_s14, %s1403_s30  ;;  %s1408_s26 = scalar_lea.hbm %s1710_s0, 1792 }
  0x44   : > { %p1409_p0 = scmp.lt.u32.totalorder %s1624_s14, %s1710_s0  ;;  %p1410_p2 = scmp.lt.u32.totalorder %s1408_s26, %s1403_s30 }
  0x45   : > { %p1406_p12 = pnand %p1405_p11, %p1404_p7  ;;  %p1412_p6 = scmp.lt.u32.totalorder %s1403_s30, %s1624_s14 }
  0x46   : > { %p1411_p3 = por %p1410_p2, %p1409_p0 }
  0x47   : > { %p1407_p13 = pneg %p1406_p12 }
  0x48   : > { %p1413_p9 = por %p1412_p6, %p1411_p3 }
  0x4a   : > { %p1414_p8 = pnand %p1413_p9, %p1407_p13 }
  0x4c   : > { %1417 = shalt.err (!%p1414_p8)
}
  0x4d   : > { %s1418_s11 = scalar_lea.vmem %s1626_s28, 896  ;;  %s1477_s27 = smov [#allocation2]  }
  0x4e   : > { %p1419_p1 = scmp.ne.s32.totalorder %s1626_s28, %s1418_s11  ;;  %s1423_s12 = sshll.u32 %s1477_s27, 4  ;;  %s1424_s12 = int_to_ptr.vmem [resolvable:$false] %s1423_s12 }
  0x4f   : > { %s1425_s16 = scalar_lea.vmem %s1424_s12, 1792  ;;  %p1426_p7 = scmp.lt.s32.totalorder %s1626_s28, %s1424_s12 }
  0x50   : > { %p1421_p4 = pnand %p1419_p1, %p1405_p11  ;;  %p1427_p12 = scmp.lt.s32.totalorder %s1425_s16, %s1418_s11 }
  0x52   : > { %p1422_p5 = pneg %p1421_p4  ;;  %p1428_p0 = por %p1427_p12, %p1426_p7 }
  0x54   : > { %p1429_p2 = pnand %p1428_p0, %p1422_p5 }
  0x56   : > { %1432 = shalt.err (!%p1429_p2)
}
  0x57   : > { %1246 = dma.hbm_to_vmem [thread:$0]  (!%p1617_p10), %s1624_s14, 896, %s1626_s28, %s206_s21  }
  0x58   : > { %p1723_p13 = scmp.ne.s32.totalorder %s1720_s24, 0 }
  0x59   : > { %s228_s17 = sand.u32 (!%p1723_p13), 1, %s1463_s19   ;;  %p1724_p11 = scmp.ne.s32.totalorder (!%p1723_p13), %s1719_s23, 0 }
  0x5a   : > { %226 = sbr.rel (%p1723_p13) target bundleno = 604 (0x25c), region = 40  ;;  %s229_s13 = scalar_lea.sflag (!%p1723_p13), [#allocation3], %s228_s17 }
  0x5b   : > { %s1225_s29 = smul.u32 (!%p1723_p13), 56, %s228_s17 }
  0x5d   : > { %s1656_s25 = scalar_lea.vmem (!%p1723_p13), [#allocation2], %s1225_s29 }
  0x61   : > { %1450 = dma.done.wait (%p1724_p11), %s229_s13, 896  }
  0x62   : > { %1452 = vsyncadd (%p1724_p11), %s229_s13, 4294966400  ;;  %p1725_p3 = scmp.eq.s32.totalorder %s1529_s22, 0 }
  0x64   : > { %1454 = dma.done.wait (%p1725_p3), [#allocation5], 7296   ;;  %p1726_p10 = pmov %p1725_p3 }
  0x65   : > { %v1290_v0 = vld [vmem:[#allocation4 + $0x40] sm:$0xff]   ;;  %v1294_v4 = vld [vmem:[#allocation4 + $0x48] sm:$0xff]   ;;  %v1298_v8 = vld [vmem:[#allocation4 + $0x50] sm:$0xff]   ;;  %v1478_v44 = vmov 0.0   ;;  %vm1479_vm0 = vmmov 0   ;;  %vm684_vm1 = vcmask 130048  }
  0x66   : > { %1456 = vsyncadd (%p1726_p10), [#allocation5], 4294960000  ;;  %v1291_v1 = vld [vmem:[#allocation4] sm:$0xff]   ;;  %1120 = vmatprep.subr.bf16.mxu0 %v1290_v0  ;;  %v1295_v5 = vld [vmem:[#allocation4 + $0x8] sm:$0xff]   ;;  %p266_p6 = scmp.lt.s32.totalorder %s1529_s22, 1  ;;  %vm962_vm2 = vcmask 23552  }
  0x67   : > { %v1292_v2 = vld [vmem:[#allocation4 + $0xc0] sm:$0xff]   ;;  %1121 = vmatpush3.bf16.msra.mxu0 %v1291_v1  ;;  %v1296_v6 = vld [vmem:[#allocation4 + $0xc8] sm:$0xff]   ;;  %v1299_v9 = vld [vmem:[#allocation4 + $0x10] sm:$0xff]  }
  0x68   : > { %v1293_v3 = vld [vmem:[#allocation4 + $0x80] sm:$0xff]   ;;  %1142 = vmatprep.subr.bf16.mxu1 %v1292_v2  ;;  %1122 = vmatprep.subr.bf16.mxu0 %v1294_v4  ;;  %v1297_v7 = vld [vmem:[#allocation4 + $0x88] sm:$0xff]   ;;  %v1300_v10 = vld [vmem:[#allocation4 + $0xd0] sm:$0xff]   ;;  %s1732_s22 = smov (!%p266_p6, %s1529_s22), 1 }
  0x69   : > { %1143 = vmatpush3.bf16.msra.mxu1 %v1293_v3  ;;  %v1301_v11 = vld [vmem:[#allocation4 + $0x90] sm:$0xff]   ;;  %v1302_v12 = vld [vmem:[#allocation4 + $0x58] sm:$0xff]   ;;  %v1306_v16 = vld [vmem:[#allocation4 + $0x60] sm:$0xff]   ;;  %s1057_s18 = sshll.u32 %s1732_s22, 3 }
  0x6a   : > { %1144 = vmatprep.subr.bf16.mxu1 %v1296_v6  ;;  %v1303_v13 = vld [vmem:[#allocation4 + $0x18] sm:$0xff]   ;;  %v1307_v17 = vld [vmem:[#allocation4 + $0x20] sm:$0xff]   ;;  %v1310_v20 = vld [vmem:[#allocation4 + $0x68] sm:$0xff]   ;;  %s269_s6 = scalar_lea.vmem %s1715_s5, %s1057_s18 }
  0x6b   : > { %1123 = vmatpush3.bf16.msra.mxu0 %v1295_v5  ;;  %v1304_v14 = vld [vmem:[#allocation4 + $0xd8] sm:$0xff]   ;;  %v1308_v18 = vld [vmem:[#allocation4 + $0xe0] sm:$0xff]   ;;  %v1311_v21 = vld [vmem:[#allocation4 + $0x28] sm:$0xff]  }
  0x6c   : > { %1124 = vmatprep.subr.bf16.mxu0 %v1298_v8  ;;  %v1305_v15 = vld [vmem:[#allocation4 + $0x98] sm:$0xff]   ;;  %v1309_v19 = vld [vmem:[#allocation4 + $0xa0] sm:$0xff]   ;;  %v1312_v22 = vld [vmem:[#allocation4 + $0xe8] sm:$0xff]  }
  0x6d   : > { %1145 = vmatpush3.bf16.msra.mxu1 %v1297_v7  ;;  %v1313_v23 = vld [vmem:[#allocation4 + $0xa8] sm:$0xff]   ;;  %v1314_v24 = vld [vmem:[#allocation4 + $0x70] sm:$0xff]   ;;  %v1318_v28 = vld [vmem:[#allocation4 + $0x78] sm:$0xff]  }
  0x6e   : > { %1146 = vmatprep.subr.bf16.mxu1 %v1300_v10  ;;  %v1315_v25 = vld [vmem:[#allocation4 + $0x30] sm:$0xff]   ;;  %v1319_v29 = vld [vmem:[#allocation4 + $0x38] sm:$0xff]   ;;  %v1322_v36 = vld [vmem:[#allocation4 + $0x140] sm:$0xff]  }
  0x6f   : > { %1125 = vmatpush3.bf16.msra.mxu0 %v1299_v9  ;;  %v1316_v26 = vld [vmem:[#allocation4 + $0xf0] sm:$0xff]   ;;  %v1320_v30 = vld [vmem:[#allocation4 + $0xf8] sm:$0xff]   ;;  %v274_v37 = vld [vmem:[%s1656_s25 + $0x18] sm:$0xff] }
  0x70   : > { %1126 = vmatprep.subr.bf16.mxu0 %v1302_v12  ;;  %v1317_v27 = vld [vmem:[#allocation4 + $0xb0] sm:$0xff]   ;;  %v1321_v33 = vld [vmem:[#allocation4 + $0xb8] sm:$0xff]   ;;  %v281_v38 = vpack.c.bf16 %v274_v37, %v274_v37  ;;  %v1323_v39 = vld [vmem:[#allocation4 + $0x100] sm:$0xff]  }
  0x71   : > { %1147 = vmatpush3.bf16.msra.mxu1 %v1301_v11  ;;  %v272_v31 = vld [vmem:[%s1656_s25 + $0x8] sm:$0xff]  ;;  %v271_v34 = vld [vmem:[%s1656_s25] sm:$0xff]  ;;  %v273_v40 = vld [vmem:[%s1656_s25 + $0x10] sm:$0xff] }
  0x72   : > { %1148 = vmatprep.subr.bf16.mxu1 %v1304_v14  ;;  %v279_v32 = vpack.c.bf16 %v272_v31, %v272_v31  ;;  %v278_v35 = vpack.c.bf16 %v271_v34, %v271_v34  ;;  %760 = vmatprep.mubr.bf16.mxu1 %v281_v38  ;;  %v280_v41 = vpack.c.bf16 %v273_v40, %v273_v40  ;;  %v1324_v42 = vld [vmem:[#allocation4 + $0x148] sm:$0xff]   ;;  %v1326_v45 = vld [vmem:[#allocation4 + $0x150] sm:$0xff]   ;;  %v1328_v47 = vld [vmem:[#allocation4 + $0x158] sm:$0xff]  }
  0x73   : > { %1127 = vmatpush3.bf16.msra.mxu0 %v1303_v13  ;;  %v1325_v43 = vld [vmem:[#allocation4 + $0x108] sm:$0xff]   ;;  %v1327_v46 = vld [vmem:[#allocation4 + $0x110] sm:$0xff]   ;;  %v1329_v48 = vld [vmem:[#allocation4 + $0x118] sm:$0xff]  }
  0x74   : > { %1128 = vmatprep.subr.bf16.mxu0 %v1306_v16  ;;  %720 = vmatprep.mubr.bf16.mxu0 %v279_v32  ;;  %v1330_v49 = vld [vmem:[#allocation4 + $0x160] sm:$0xff]   ;;  %v1332_v51 = vld [vmem:[#allocation4 + $0x168] sm:$0xff]   ;;  %v276_v54 = vld [vmem:[%s1656_s25 + $0x28] sm:$0xff] }
  0x75   : > { %1149 = vmatpush3.bf16.msra.mxu1 %v1305_v15  ;;  %v1331_v50 = vld [vmem:[#allocation4 + $0x120] sm:$0xff]   ;;  %v1333_v52 = vld [vmem:[#allocation4 + $0x128] sm:$0xff]   ;;  %v1334_v55 = vld [vmem:[#allocation4 + $0x170] sm:$0xff]   ;;  %v283_v56 = vpack.c.bf16 %v276_v54, %v276_v54 }
  0x76   : > { %1150 = vmatprep.subr.bf16.mxu1 %v1308_v18  ;;  %v1338_v53 = vld [vmem:[#allocation4 + $0x180] sm:$0xff]   ;;  %v1335_v59 = vld [vmem:[#allocation4 + $0x130] sm:$0xff]   ;;  %v1336_v60 = vld [vmem:[#allocation4 + $0x178] sm:$0xff]  }
  0x77   : > { %1129 = vmatpush3.bf16.msra.mxu0 %v1307_v17  ;;  %v277_v57 = vld [vmem:[%s1656_s25 + $0x30] sm:$0xff]  ;;  %v275_v62 = vld [vmem:[%s1656_s25 + $0x20] sm:$0xff] }
  0x78   : > { %1130 = vmatprep.subr.bf16.mxu0 %v1310_v20  ;;  %v284_v58 = vpack.c.bf16 %v277_v57, %v277_v57  ;;  %v1337_v61 = vld [vmem:[#allocation4 + $0x138] sm:$0xff]   ;;  %v282_v63 = vpack.c.bf16 %v275_v62, %v275_v62  ;;  %v1339_v0 = vld [vmem:[#allocation6] sm:$0xff]   ;;  %v1340_v1 = vld [vmem:[#allocation6 + $0x8] sm:$0xff]  }
  0x79   : > { %1151 = vmatpush3.bf16.msra.mxu1 %v1309_v19  ;;  %v1341_v2 = vld [vmem:[#allocation6 + $0x10] sm:$0xff]   ;;  %v1342_v3 = vld [vmem:[#allocation6 + $0x18] sm:$0xff]   ;;  %v1343_v4 = vld [vmem:[#allocation6 + $0x20] sm:$0xff]  }
  0x7a   : > { %1152 = vmatprep.subr.bf16.mxu1 %v1312_v22  ;;  %v1344_v5 = vld [vmem:[#allocation6 + $0x28] sm:$0xff]   ;;  %v1345_v6 = vld [vmem:[#allocation6 + $0x30] sm:$0xff]   ;;  %v1346_v7 = vld [vmem:[#allocation6 + $0x38] sm:$0xff]  }
  0x7b   : > { %1131 = vmatpush3.bf16.msra.mxu0 %v1311_v21  ;;  %v1058_v9 = vld [vmem:[%s1712_s2] ss:$0 sm:$0xff] }
  0x7c   : > { %1132 = vmatprep.subr.bf16.mxu0 %v1314_v24  ;;  %v1117_v34 = vld [vmem:[%s1714_s4] ss:$0 sm:$0xff] }
  0x7d   : > { %1153 = vmatpush3.bf16.msra.mxu1 %v1313_v23 }
  0x7e   : > { %1154 = vmatprep.subr.bf16.mxu1 %v1316_v26 }
  0x7f   : > { %1133 = vmatpush3.bf16.msra.mxu0 %v1315_v25 }
  0x80   : > { %1134 = vmatprep.subr.bf16.mxu0 %v1318_v28 }
  0x81   : > { %1155 = vmatpush3.bf16.msra.mxu1 %v1317_v27 }
  0x82   : > { %1156 = vmatprep.subr.bf16.mxu1 %v1320_v30 }
  0x83   : > { %1135 = vmatpush3.bf16.msra.mxu0 %v1319_v29 }
  0x84   : > { %1164 = vmatprep.subr.bf16.mxu0 %v1322_v36 }
  0x85   : > { %1157 = vmatpush3.bf16.msra.mxu1 %v1321_v33 }
  0x86   : > { %721 = vmatmul.mubr.bf16.vlgmr.msra.gmra.mrb[0].mxu0 %v278_v35  ;;  %1197 = vmatprep.subr.bf16.mxu1 %v1478_v44 }
  0x87   : > { %1165 = vmatpush3.bf16.msra.mxu0 %v1323_v39  ;;  %800 = vmatprep.mubr.bf16.mxu0 %v283_v56 }
  0x88   : > { %761 = vmatmul.mubr.bf16.vlgmr.msra.gmra.mrb[0].mxu1 %v280_v41  ;;  %1166 = vmatprep.subr.bf16.mxu0 %v1324_v42 }
  0x89   : > { %1199 = vmatprep.mubr.msk.bf16.mxu1 %vm1479_vm0, %v1478_v44  ;;  %1198 = vmatpush3.bf16.msra.mxu1 %v1338_v53 }
  0x8a   : > { %1203 = vmatprep.subr.bf16.mxu1 %v1478_v44 }
  0x8b   : > { %1167 = vmatpush3.bf16.msra.mxu0 %v1325_v43 }
  0x8c   : > { %1168 = vmatprep.subr.bf16.mxu0 %v1326_v45 }
  0x8f   : > { %1169 = vmatpush3.bf16.msra.mxu0 %v1327_v46 }
  0x90   : > { %1170 = vmatprep.subr.bf16.mxu0 %v1328_v47  ;;  %1200 = vmatmul.mubr.msk.bf16.vlgmr.msra.gmra.mrb[4].mxu1 %vm684_vm1, %v284_v58 }
  0x91   : > { %1219 = vmatprep.mubr.msk.bf16.mxu1 %vm1479_vm0, %v1478_v44  ;;  %1204 = vmatpush3.bf16.msra.mxu1 %v1339_v0 }
  0x92   : > { %1205 = vmatprep.subr.bf16.mxu1 %v1478_v44 }
  0x93   : > { %1171 = vmatpush3.bf16.msra.mxu0 %v1329_v48 }
  0x94   : > { %1172 = vmatprep.subr.bf16.mxu0 %v1330_v49 }
  0x95   : > { %1206 = vmatpush3.bf16.msra.mxu1 %v1340_v1 }
  0x96   : > { %1207 = vmatprep.subr.bf16.mxu1 %v1478_v44 }
  0x97   : > { %1173 = vmatpush3.bf16.msra.mxu0 %v1331_v50 }
  0x98   : > { %1174 = vmatprep.subr.bf16.mxu0 %v1332_v51 }
  0x99   : > { %1208 = vmatpush3.bf16.msra.mxu1 %v1341_v2 }
  0x9a   : > { %1209 = vmatprep.subr.bf16.mxu1 %v1478_v44 }
  0x9b   : > { %1175 = vmatpush3.bf16.msra.mxu0 %v1333_v52 }
  0x9c   : > { %1176 = vmatprep.subr.bf16.mxu0 %v1334_v55 }
  0x9d   : > { %1210 = vmatpush3.bf16.msra.mxu1 %v1342_v3 }
  0x9e   : > { %1211 = vmatprep.subr.bf16.mxu1 %v1478_v44 }
  0x9f   : > { %1177 = vmatpush3.bf16.msra.mxu0 %v1335_v59 }
  0xa0   : > { %1178 = vmatprep.subr.bf16.mxu0 %v1336_v60 }
  0xa1   : > { %1212 = vmatpush3.bf16.msra.mxu1 %v1343_v4 }
  0xa2   : > { %1213 = vmatprep.subr.bf16.mxu1 %v1478_v44 }
  0xa3   : > { %1179 = vmatpush3.bf16.msra.mxu0 %v1337_v61 }
  0xa5   : > { %1214 = vmatpush3.bf16.msra.mxu1 %v1344_v5 }
  0xa6   : > { %801 = vmatmul.mubr.bf16.vlgmr.msra.gmra.mrb[4].mxu0 %v282_v63  ;;  %1215 = vmatprep.subr.bf16.mxu1 %v1478_v44 }
  0xa9   : > { %1216 = vmatpush3.bf16.msra.mxu1 %v1345_v6 }
  0xaa   : > { %1217 = vmatprep.subr.bf16.mxu1 %v1478_v44 }
  0xad   : > { %1218 = vmatpush3.bf16.msra.mxu1 %v1346_v7 }
 0x159   : > { %v1136_v8 = vpop.f32.mrb[0].mxu0 }
 0x15a   : > { %v1137_v10 = vpop.f32.mrb[1].mxu0 }
 0x15b   : > { %v1138_v11 = vadd.f32 %v1137_v10, %v1136_v8  ;;  %v1139_v12 = vpop.f32.mrb[2].mxu0  ;;  %v1158_v13 = vpop.f32.mrb[0].mxu1 }
 0x15c   : > { %v1140_v14 = vpop.f32.mrb[3].mxu0  ;;  %v1159_v16 = vpop.f32.mrb[1].mxu1 }
 0x15d   : > { %v723_v15 = vadd.f32 %v1138_v11, %v1058_v9  ;;  %v1160_v17 = vadd.f32 %v1159_v16, %v1158_v13  ;;  %v1161_v18 = vpop.f32.mrb[2].mxu1 }
 0x15e   : > { %v1162_v19 = vpop.f32.mrb[3].mxu1 }
 0x15f   : > { %v763_v20 = vadd.f32 %v1160_v17, %v723_v15 }
 0x163   : > { %v842_v21 = vpop.f32.mrb[4].mxu1 }
 0x164   : > { %v1201_v22 = vpop.f32.mrb[5].mxu1 }
 0x165   : > { %v845_v23 = vpop.f32.mrb[6].mxu1 }
 0x166   : > { %v1202_v24 = vpop.f32.mrb[7].mxu1 }
 0x179   : > { %v1180_v25 = vpop.f32.mrb[4].mxu0 }
 0x17a   : > { %v1181_v26 = vpop.f32.mrb[5].mxu0 }
 0x17b   : > { %v1182_v27 = vadd.f32 %v1181_v26, %v1180_v25  ;;  %v1183_v28 = vpop.f32.mrb[6].mxu0 }
 0x17c   : > { %v1184_v29 = vpop.f32.mrb[7].mxu0 }
 0x17d   : > { %v803_v30 = vadd.f32 %v1182_v27, %v763_v20 }
 0x17f   : > { %v843_v31 = vadd.f32 %v842_v21, %v803_v30 }
 0x181   : > { %v848_v32 = vmax.f32 %v843_v31, 0.0 }
 0x183   : > { %v849_v33 = vpack.c.bf16 %v848_v32, %v848_v32 }
 0x185   : > { %1220 = vmatmul.mubr.bf16.vlgmr.msra.gmra.mrb[8].mxu1 %v849_v33 }
 0x258   : > { %v948_v35 = vpop.f32.mrb[8].mxu1 }
 0x259   : > { %v961_v36 = vadd.f32 %v1117_v34, %v948_v35  ;;  %v1221_v37 = vpop.f32.mrb[9].mxu1 }
 0x25a   : > { %v951_v38 = vpop.f32.mrb[10].mxu1 }
 0x25b   : > { %963 = vst.msk [vmem:[%s269_s6] sm:$0xff] %vm962_vm2, %v961_v36  ;;  %v1222_v39 = vpop.f32.mrb[11].mxu1 }
 0x25c PF: > { %p16_p9 = scmp.ge.s32.totalorder %s1603_s10, 4   ;;  %s1727_s18 = smov %s1463_s19 }
 0x25d   : > { %s1728_s19 = smov %s1467_s20  ;;  %s1729_s20 = smov %s1614_s15 }
 0x25e   : > { %s1730_s21 = smov %s1603_s10  ;;  %18 = sbr.rel (!%p16_p9) target bundleno = 4 (0x4), region = 88 }
 0x265   :  { %983 = vsyncpa [#allocation3], 1 }
 0x266   :  { %985 = vsyncpa [#allocation3 + $0x1], 1 }
 0x267   :  { %986 = vsyncpa [#allocation5], 1 }

</bundles_post_ra>
